<compile_context>
chip_gen: v6e
topology: v6e:2x2x1
jax: 0.10.0
libtpu: 0.0.40
codegen_flags: <defaults>
</compile_context>

<pallas_src>
import functools

import jax
import jax.numpy as jnp
from jax.experimental import pallas as pl
from jax.experimental.pallas import tpu as pltpu

INPUT_DIM = 18
HIDDEN_DIM = 32
NUM_LAYERS = 2
OUTPUT_DIM = 1

# Hard tile cap: f32 intermediates are ~1.5-2 KiB per batch element per step,
# so TB=8192 stays well inside the 32 MiB scoped-VMEM default on all chips.
_MAX_TB = 8192


def _sigmoid(x):
    # sigmoid(x) == 0.5 * (tanh(x/2) + 1): one EUP op + two cheap VPU ops,
    # mathematically identical to the exp-based form.
    return 0.5 * (jnp.tanh(x * 0.5) + 1.0)


def _lstm_forward_kernel(x_ref, wih0_ref, b0_ref, wih1_ref, b1_ref,
                         wlin_ref, blin_ref, out_ref, *, act_dtype):
    H = HIDDEN_DIM
    x = x_ref[...]                                          # (INPUT_DIM, TB) f32

    def cell(w_ref, b_ref, inp):
        # Gate rows packed [i | g | o] (dead f-gate pruned at pack time).
        gates = (jnp.dot(w_ref[...], inp, preferred_element_type=jnp.float32)
                 + b_ref[...]).astype(act_dtype)            # (3H, TB)
        i = _sigmoid(gates[0 * H:1 * H, :])
        g = jnp.tanh(gates[1 * H:2 * H, :])
        o = _sigmoid(gates[2 * H:3 * H, :])
        # c_prev = 0 -> c = i*g ; h = o*tanh(c)
        return (o * jnp.tanh(i * g)).astype(jnp.float32)    # (H, TB)

    h0 = cell(wih0_ref, b0_ref, x)                          # layer 0
    h1 = cell(wih1_ref, b1_ref, h0)                         # layer 1

    # Final Linear(H -> 1): VPU multiply + sublane reduction (no M=1 MXU pass).
    out_ref[...] = (jnp.sum(wlin_ref[...] * h1, axis=0, keepdims=True)
                    + blin_ref[...])                        # (1, TB) lane-dense


def _round_up(n, m):
    return ((n + m - 1) // m) * m


def _pack_igo_rows(w):
    """Drop the dead f-gate: PyTorch [i|f|g|o] rows -> [i|g|o] rows."""
    H = HIDDEN_DIM
    return jnp.concatenate([w[0:H], w[2 * H:3 * H], w[3 * H:4 * H]], axis=0)


def _default_activation_dtype():
    """bf16 gate activations on chips with a bf16 EUP (v6e/v7x); f32 on v5e."""
    try:
        kind = jax.devices()[0].device_kind.lower()
    except Exception:
        return jnp.float32
    if ("v6" in kind) or ("v7" in kind):
        return jnp.bfloat16
    return jnp.float32


def _pick_batch_tile(B, block_b):
    TB = _round_up(max(min(block_b, _MAX_TB), 128), 128)     # lane multiple, VMEM-safe
    TB = min(TB, _round_up(max(B, 1), 128))                  # no tile bigger than batch
    if B >= 256:
        # Guarantee >= 2 grid steps so ("parallel",) can feed both v7x TCs.
        TB = min(TB, _round_up(pl.cdiv(B, 2), 128))
    B_pad = _round_up(max(B, 1), TB)
    return TB, B_pad


def lstm_model_forward(x, params, *, block_b=8192, activation_dtype=None):
    """x: (B, INPUT_DIM) float32 -> (B,) float32."""
    B = x.shape[0]
    H = HIDDEN_DIM
    if activation_dtype is None:
        activation_dtype = _default_activation_dtype()

    TB, B_pad = _pick_batch_tile(B, block_b)
    num_tiles = B_pad // TB

    # Pad batch to a multiple of TB, then put batch on the lane (last) axis.
    x_p = jnp.pad(x.astype(jnp.float32), ((0, B_pad - B), (0, 0))).T  # (18, B_pad)

    # Weights in native PyTorch orientation (output dim on sublanes), with the
    # dead f-gate rows pruned -> (3H, .).  Biases fold b_ih + b_hh (the
    # recurrent bias applies even though h_prev = 0).
    wih0 = _pack_igo_rows(params["w_ih_l0"])                           # (3H, 18)
    wih1 = _pack_igo_rows(params["w_ih_l1"])                           # (3H, H)
    b0 = _pack_igo_rows(
        (params["b_ih_l0"] + params["b_hh_l0"]).reshape(4 * H, 1))     # (3H, 1)
    b1 = _pack_igo_rows(
        (params["b_ih_l1"] + params["b_hh_l1"]).reshape(4 * H, 1))     # (3H, 1)
    wlin = params["w_lin"].T                                           # (H, 1)
    blin = params["b_lin"].reshape(OUTPUT_DIM, 1)                      # (1, 1)

    # Weights/biases: constant block index -> DMA'd once, resident across grid.
    resident = lambda shape: pl.BlockSpec(shape, lambda i: tuple(0 for _ in shape))

    kernel = functools.partial(_lstm_forward_kernel, act_dtype=activation_dtype)

    out = pl.pallas_call(
        kernel,
        out_shape=jax.ShapeDtypeStruct((OUTPUT_DIM, B_pad), jnp.float32),
        grid=(num_tiles,),
        in_specs=[
            pl.BlockSpec((INPUT_DIM, TB), lambda i: (0, i)),   # x tile streams
            resident((3 * H, INPUT_DIM)),
            resident((3 * H, 1)),
            resident((3 * H, H)),
            resident((3 * H, 1)),
            resident((H, OUTPUT_DIM)),
            resident((OUTPUT_DIM, 1)),
        ],
        out_specs=pl.BlockSpec((OUTPUT_DIM, TB), lambda i: (0, i)),
        compiler_params=pltpu.CompilerParams(
            dimension_semantics=("parallel",)),                # megacore on v7x
    )(x_p, wih0, b0, wih1, b1, wlin, blin)

    return out[0, :B]


def init_params(key):
    """Deterministic init mirroring PyTorch's U(-1/sqrt(H), 1/sqrt(H))."""
    H = HIDDEN_DIM
    bound = 1.0 / jnp.sqrt(jnp.array(H, jnp.float32))
    ks = jax.random.split(key, 10)
    u = lambda k, shape: jax.random.uniform(k, shape, jnp.float32, -bound, bound)
    return {
        "w_ih_l0": u(ks[0], (4 * H, INPUT_DIM)),
        "w_hh_l0": u(ks[1], (4 * H, H)),   # unused in forward (h_prev = 0)
        "b_ih_l0": u(ks[2], (4 * H,)),
        "b_hh_l0": u(ks[3], (4 * H,)),
        "w_ih_l1": u(ks[4], (4 * H, H)),
        "w_hh_l1": u(ks[5], (4 * H, H)),   # unused in forward (h_prev = 0)
        "b_ih_l1": u(ks[6], (4 * H,)),
        "b_hh_l1": u(ks[7], (4 * H,)),
        "w_lin":   u(ks[8], (OUTPUT_DIM, H)),
        "b_lin":   u(ks[9], (OUTPUT_DIM,)),
    }


def _reference_forward(x, params):
    """Pure-JAX reference of the PyTorch forward (seq_len=1, zero states)."""
    H = HIDDEN_DIM

    def cell(inp, w_ih, b_ih, b_hh):
        g = inp @ w_ih.T + b_ih + b_hh            # [i | f | g | o]
        i = jax.nn.sigmoid(g[:, 0:H])
        gg = jnp.tanh(g[:, 2 * H:3 * H])
        o = jax.nn.sigmoid(g[:, 3 * H:4 * H])
        c = i * gg                                # f * c_prev = 0
        return o * jnp.tanh(c)

    h0 = cell(x, params["w_ih_l0"], params["b_ih_l0"], params["b_hh_l0"])
    h1 = cell(h0, params["w_ih_l1"], params["b_ih_l1"], params["b_hh_l1"])
    return (h1 @ params["w_lin"].T + params["b_lin"])[:, 0]


if __name__ == "__main__":
    key = jax.random.PRNGKey(0)
    pkey, xkey, xkey2 = jax.random.split(key, 3)
    params = init_params(pkey)

    # Small-batch exact (f32) check: single grid step + tail padding.
    B = 8
    x = jax.random.normal(xkey, (B, INPUT_DIM), jnp.float32)
    out = jax.block_until_ready(
        lstm_model_forward(x, params, activation_dtype=jnp.float32))
    ref = _reference_forward(x, params)
    assert out.shape == (B,)
    assert jnp.allclose(out, ref, atol=1e-4, rtol=1e-4)

    # Multi-tile exact (f32) check: exercises the batch grid / pipelining, the
    # >=2-tile megacore path, and non-multiple-of-TB padding.
    B2 = 600
    x2 = jax.random.normal(xkey2, (B2, INPUT_DIM), jnp.float32)
    out2 = jax.block_until_ready(
        lstm_model_forward(x2, params, block_b=256,
                           activation_dtype=jnp.float32))
    ref2 = _reference_forward(x2, params)
    assert out2.shape == (B2,)
    assert jnp.allclose(out2, ref2, atol=1e-4, rtol=1e-4)

    # Explicit bf16 gate-activation path (EUP win on v6e/v7x); f32 matmul
    # accumulation, so only a looser tolerance is needed.
    out_bf16 = jax.block_until_ready(
        lstm_model_forward(x2, params, block_b=256,
                           activation_dtype=jnp.bfloat16))
    assert jnp.allclose(out_bf16, ref2, atol=3e-2, rtol=3e-2)

    # Default path: generation-aware activation dtype + default tile size.
    out_def = jax.block_until_ready(lstm_model_forward(x2, params))
    assert out_def.shape == (B2,)
    assert jnp.allclose(out_def, ref2, atol=3e-2, rtol=3e-2)

    print("KERNEL_OK")
</pallas_src>

<mosaic_0001>
module attributes {stable_mosaic.version = 11 : i64} {
  func.func @_lstm_forward_kernel(%arg0: i32, %arg1: memref<18x128xf32, #tpu.memory_space<vmem>>, %arg2: memref<96x18xf32, #tpu.memory_space<vmem>>, %arg3: memref<96x1xf32, #tpu.memory_space<vmem>>, %arg4: memref<96x32xf32, #tpu.memory_space<vmem>>, %arg5: memref<96x1xf32, #tpu.memory_space<vmem>>, %arg6: memref<32x1xf32, #tpu.memory_space<vmem>>, %arg7: memref<1x1xf32, #tpu.memory_space<vmem>>, %arg8: memref<1x128xf32, #tpu.memory_space<vmem>>) attributes {dimension_semantics = [#tpu.dimension_semantics<parallel>], iteration_bounds = array<i64: 1>, scalar_prefetch = 0 : i64, scratch_operands = 0 : i64, tpu.core_type = #tpu.core_type<tc>, window_params = [{transform_indices = @transform_0, window_bounds = array<i64: 18, 128>}, {pipeline_mode = #tpu.pipeline_mode<synchronous>, transform_indices = @transform_1, window_bounds = array<i64: 96, 18>}, {pipeline_mode = #tpu.pipeline_mode<synchronous>, transform_indices = @transform_2, window_bounds = array<i64: 96, 1>}, {pipeline_mode = #tpu.pipeline_mode<synchronous>, transform_indices = @transform_3, window_bounds = array<i64: 96, 32>}, {pipeline_mode = #tpu.pipeline_mode<synchronous>, transform_indices = @transform_4, window_bounds = array<i64: 96, 1>}, {pipeline_mode = #tpu.pipeline_mode<synchronous>, transform_indices = @transform_5, window_bounds = array<i64: 32, 1>}, {pipeline_mode = #tpu.pipeline_mode<synchronous>, transform_indices = @transform_6, window_bounds = array<i64: 1, 1>}, {transform_indices = @transform_7, window_bounds = array<i64: 1, 128>}]} {
    %c0 = arith.constant 0 : index
    %c0_0 = arith.constant 0 : index
    %0 = vector.load %arg1[%c0, %c0_0] : memref<18x128xf32, #tpu.memory_space<vmem>>, vector<18x128xf32>
    %c0_1 = arith.constant 0 : index
    %c0_2 = arith.constant 0 : index
    %1 = vector.load %arg2[%c0_1, %c0_2] : memref<96x18xf32, #tpu.memory_space<vmem>>, vector<96x18xf32>
    %cst = arith.constant dense<0.000000e+00> : vector<96x128xf32>
    %2 = tpu.matmul %1, %0, %cst {dimension_numbers = #tpu.dot_dimension_numbers<[1], [0], [0], [1], [0, 0, 1, 1], [], []>} : vector<96x18xf32>, vector<18x128xf32>, vector<96x128xf32> -> vector<96x128xf32>
    %c0_3 = arith.constant 0 : index
    %c0_4 = arith.constant 0 : index
    %3 = vector.load %arg3[%c0_3, %c0_4] : memref<96x1xf32, #tpu.memory_space<vmem>>, vector<96x1xf32>
    %4 = vector.broadcast %3 : vector<96x1xf32> to vector<96x128xf32>
    %5 = arith.addf %2, %4 : vector<96x128xf32>
    %6 = vector.extract_strided_slice %5 {offsets = [0, 0], sizes = [32, 128], strides = [1, 1]} : vector<96x128xf32> to vector<32x128xf32>
    %cst_5 = arith.constant 5.000000e-01 : f32
    %7 = vector.broadcast %cst_5 : f32 to vector<32x128xf32>
    %8 = arith.mulf %6, %7 : vector<32x128xf32>
    %9 = math.tanh %8 : vector<32x128xf32>
    %cst_6 = arith.constant 1.000000e+00 : f32
    %10 = vector.broadcast %cst_6 : f32 to vector<32x128xf32>
    %11 = arith.addf %9, %10 : vector<32x128xf32>
    %cst_7 = arith.constant 5.000000e-01 : f32
    %12 = vector.broadcast %cst_7 : f32 to vector<32x128xf32>
    %13 = arith.mulf %12, %11 : vector<32x128xf32>
    %14 = vector.extract_strided_slice %5 {offsets = [32, 0], sizes = [32, 128], strides = [1, 1]} : vector<96x128xf32> to vector<32x128xf32>
    %15 = math.tanh %14 : vector<32x128xf32>
    %16 = vector.extract_strided_slice %5 {offsets = [64, 0], sizes = [32, 128], strides = [1, 1]} : vector<96x128xf32> to vector<32x128xf32>
    %cst_8 = arith.constant 5.000000e-01 : f32
    %17 = vector.broadcast %cst_8 : f32 to vector<32x128xf32>
    %18 = arith.mulf %16, %17 : vector<32x128xf32>
    %19 = math.tanh %18 : vector<32x128xf32>
    %cst_9 = arith.constant 1.000000e+00 : f32
    %20 = vector.broadcast %cst_9 : f32 to vector<32x128xf32>
    %21 = arith.addf %19, %20 : vector<32x128xf32>
    %cst_10 = arith.constant 5.000000e-01 : f32
    %22 = vector.broadcast %cst_10 : f32 to vector<32x128xf32>
    %23 = arith.mulf %22, %21 : vector<32x128xf32>
    %24 = arith.mulf %13, %15 : vector<32x128xf32>
    %25 = math.tanh %24 : vector<32x128xf32>
    %26 = arith.mulf %23, %25 : vector<32x128xf32>
    %c0_11 = arith.constant 0 : index
    %c0_12 = arith.constant 0 : index
    %27 = vector.load %arg4[%c0_11, %c0_12] : memref<96x32xf32, #tpu.memory_space<vmem>>, vector<96x32xf32>
    %cst_13 = arith.constant dense<0.000000e+00> : vector<96x128xf32>
    %28 = tpu.matmul %27, %26, %cst_13 {dimension_numbers = #tpu.dot_dimension_numbers<[1], [0], [0], [1], [0, 0, 1, 1], [], []>} : vector<96x32xf32>, vector<32x128xf32>, vector<96x128xf32> -> vector<96x128xf32>
    %c0_14 = arith.constant 0 : index
    %c0_15 = arith.constant 0 : index
    %29 = vector.load %arg5[%c0_14, %c0_15] : memref<96x1xf32, #tpu.memory_space<vmem>>, vector<96x1xf32>
    %30 = vector.broadcast %29 : vector<96x1xf32> to vector<96x128xf32>
    %31 = arith.addf %28, %30 : vector<96x128xf32>
    %32 = vector.extract_strided_slice %31 {offsets = [0, 0], sizes = [32, 128], strides = [1, 1]} : vector<96x128xf32> to vector<32x128xf32>
    %cst_16 = arith.constant 5.000000e-01 : f32
    %33 = vector.broadcast %cst_16 : f32 to vector<32x128xf32>
    %34 = arith.mulf %32, %33 : vector<32x128xf32>
    %35 = math.tanh %34 : vector<32x128xf32>
    %cst_17 = arith.constant 1.000000e+00 : f32
    %36 = vector.broadcast %cst_17 : f32 to vector<32x128xf32>
    %37 = arith.addf %35, %36 : vector<32x128xf32>
    %cst_18 = arith.constant 5.000000e-01 : f32
    %38 = vector.broadcast %cst_18 : f32 to vector<32x128xf32>
    %39 = arith.mulf %38, %37 : vector<32x128xf32>
    %40 = vector.extract_strided_slice %31 {offsets = [32, 0], sizes = [32, 128], strides = [1, 1]} : vector<96x128xf32> to vector<32x128xf32>
    %41 = math.tanh %40 : vector<32x128xf32>
    %42 = vector.extract_strided_slice %31 {offsets = [64, 0], sizes = [32, 128], strides = [1, 1]} : vector<96x128xf32> to vector<32x128xf32>
    %cst_19 = arith.constant 5.000000e-01 : f32
    %43 = vector.broadcast %cst_19 : f32 to vector<32x128xf32>
    %44 = arith.mulf %42, %43 : vector<32x128xf32>
    %45 = math.tanh %44 : vector<32x128xf32>
    %cst_20 = arith.constant 1.000000e+00 : f32
    %46 = vector.broadcast %cst_20 : f32 to vector<32x128xf32>
    %47 = arith.addf %45, %46 : vector<32x128xf32>
    %cst_21 = arith.constant 5.000000e-01 : f32
    %48 = vector.broadcast %cst_21 : f32 to vector<32x128xf32>
    %49 = arith.mulf %48, %47 : vector<32x128xf32>
    %50 = arith.mulf %39, %41 : vector<32x128xf32>
    %51 = math.tanh %50 : vector<32x128xf32>
    %52 = arith.mulf %49, %51 : vector<32x128xf32>
    %c0_22 = arith.constant 0 : index
    %c0_23 = arith.constant 0 : index
    %53 = vector.load %arg6[%c0_22, %c0_23] : memref<32x1xf32, #tpu.memory_space<vmem>>, vector<32x1xf32>
    %54 = vector.broadcast %53 : vector<32x1xf32> to vector<32x128xf32>
    %55 = arith.mulf %54, %52 : vector<32x128xf32>
    %cst_24 = arith.constant dense<0.000000e+00> : vector<128xf32>
    %56 = vector.multi_reduction <add>, %55, %cst_24 [0] : vector<32x128xf32> to vector<128xf32>
    %57 = vector.shape_cast %56 : vector<128xf32> to vector<1x128xf32>
    %c0_25 = arith.constant 0 : index
    %c0_26 = arith.constant 0 : index
    %58 = vector.load %arg7[%c0_25, %c0_26] : memref<1x1xf32, #tpu.memory_space<vmem>>, vector<1x1xf32>
    %59 = vector.broadcast %58 : vector<1x1xf32> to vector<1x128xf32>
    %60 = arith.addf %57, %59 : vector<1x128xf32>
    %c0_27 = arith.constant 0 : index
    %c0_28 = arith.constant 0 : index
    %61 = vector.load %arg8[%c0_27, %c0_28] : memref<1x128xf32, #tpu.memory_space<vmem>>, vector<1x128xf32>
    tpu.vector_store %arg8[%c0_27, %c0_28], %60 {strides = array<i32>} : memref<1x128xf32, #tpu.memory_space<vmem>>, vector<1x128xf32>,
    return
  }
  func.func @transform_0(%arg0: i32) -> (i32, i32) {
    %c0_i32 = arith.constant 0 : i32
    %c0_i32_0 = arith.constant 0 : i32
    return %c0_i32, %arg0 : i32, i32
  }
  func.func @transform_1(%arg0: i32) -> (i32, i32) {
    %c0_i32 = arith.constant 0 : i32
    %c0_i32_0 = arith.constant 0 : i32
    %c0_i32_1 = arith.constant 0 : i32
    return %c0_i32, %c0_i32_0 : i32, i32
  }
  func.func @transform_2(%arg0: i32) -> (i32, i32) {
    %c0_i32 = arith.constant 0 : i32
    %c0_i32_0 = arith.constant 0 : i32
    %c0_i32_1 = arith.constant 0 : i32
    return %c0_i32, %c0_i32_0 : i32, i32
  }
  func.func @transform_3(%arg0: i32) -> (i32, i32) {
    %c0_i32 = arith.constant 0 : i32
    %c0_i32_0 = arith.constant 0 : i32
    %c0_i32_1 = arith.constant 0 : i32
    return %c0_i32, %c0_i32_0 : i32, i32
  }
  func.func @transform_4(%arg0: i32) -> (i32, i32) {
    %c0_i32 = arith.constant 0 : i32
    %c0_i32_0 = arith.constant 0 : i32
    %c0_i32_1 = arith.constant 0 : i32
    return %c0_i32, %c0_i32_0 : i32, i32
  }
  func.func @transform_5(%arg0: i32) -> (i32, i32) {
    %c0_i32 = arith.constant 0 : i32
    %c0_i32_0 = arith.constant 0 : i32
    %c0_i32_1 = arith.constant 0 : i32
    return %c0_i32, %c0_i32_0 : i32, i32
  }
  func.func @transform_6(%arg0: i32) -> (i32, i32) {
    %c0_i32 = arith.constant 0 : i32
    %c0_i32_0 = arith.constant 0 : i32
    %c0_i32_1 = arith.constant 0 : i32
    return %c0_i32, %c0_i32_0 : i32, i32
  }
  func.func @transform_7(%arg0: i32) -> (i32, i32) {
    %c0_i32 = arith.constant 0 : i32
    %c0_i32_0 = arith.constant 0 : i32
    return %c0_i32, %arg0 : i32, i32
  }
}

</mosaic_0001>

<bundles_post_ra>
// kernel: tpu_custom_call.1
= control target key start
LH: loop header
LB: loop body
LE: loop exit
PB: predicated region body
PF: predicated region fallthrough
CT: control target
= control target key end

     0   :  { %s1120_s0 = inlined_call_operand.vmem [shape: f32[18,128], index: 0, kind: input, shape index: {}]   ;;  %s1121_s1 = inlined_call_operand.vmem [shape: f32[96,18], index: 1, kind: input, shape index: {}]   ;;  %s1122_s2 = inlined_call_operand.vmem [shape: f32[96,1], index: 2, kind: input, shape index: {}]   ;;  %s1123_s3 = inlined_call_operand.vmem [shape: f32[96,32], index: 3, kind: input, shape index: {}]   ;;  %s1124_s4 = inlined_call_operand.vmem [shape: f32[96,1], index: 4, kind: input, shape index: {}]   ;;  %s1125_s5 = inlined_call_operand.vmem [shape: f32[32,1], index: 5, kind: input, shape index: {}]   ;;  %s1126_s6 = inlined_call_operand.<no memory space> [shape: f32[1,1], index: 6, kind: input, shape index: {}]   ;;  %s1127_s7 = inlined_call_operand.hbm [shape: f32[1,128], index: 7, kind: output, shape index: {}]  }
   0x1   :  { %v12_v0 = vstv %s1126_s6 }
   0x2   :  { %13 = vst [vmem:[#allocation2] sm:$0x1] %v12_v0 }
   0x3   :  { %v31_v1 = vld [vmem:[%s1120_s0 + $0x10] sm:$0x3]  ;;  %vm153_vm0 = vcmask 1041408   ;;  %v30_v2 = vld [vmem:[%s1120_s0 + $0x8] sm:$0xff]  ;;  %vm116_vm1 = vcmask 146432   ;;  %v32_v3 = vld [vmem:[%s1121_s1] sm:$0xff] }
   0x4   :  { %743 = vmatprep.subr.msk.mxu0 %vm153_vm0, %v31_v1  ;;  %v29_v4 = vld [vmem:[%s1120_s0] sm:$0xff]  ;;  %749 = vmatprep.mubr.msk.f32.mxu0 %vm116_vm1, %v32_v3  ;;  %v883_v5 = vmov 0   ;;  %v33_v6 = vld [vmem:[%s1121_s1 + $0x8] sm:$0xff]  ;;  %v47_v7 = vld [vmem:[%s1122_s2 + $0x18] sm:$0xff] }
   0x5   :  { %744 = vmatpush3.msk.msra.mxu0 %vm153_vm0, %v31_v1  ;;  %795 = vset.pattern.permute.xlu0 %v883_v5  ;;  %v34_v8 = vld [vmem:[%s1121_s1 + $0x10] sm:$0xff]  ;;  %v45_v9 = vld [vmem:[%s1122_s2 + $0x8] sm:$0xff]  ;;  %v44_v11 = vld [vmem:[%s1122_s2] sm:$0xff] }
   0x6   :  { %745 = vmatprep.subr.mxu0 %v30_v2  ;;  %796 = vset.pattern.permute.xlu1 %v883_v5  ;;  %v46_v10 = vld [vmem:[%s1122_s2 + $0x10] sm:$0xff]  ;;  %v35_v12 = vld [vmem:[%s1121_s1 + $0x18] sm:$0xff]  ;;  %v36_v13 = vld [vmem:[%s1121_s1 + $0x20] sm:$0xff] }
   0x7   :  { %746 = vmatpush3.msra.mxu0 %v30_v2  ;;  %73 = vperm.xlu0 %795, %v47_v7   ;;  %v51_v14 = vld [vmem:[%s1122_s2 + $0x38] sm:$0xff]  ;;  %v50_v15 = vld [vmem:[%s1122_s2 + $0x30] sm:$0xff]  ;;  %v37_v16 = vld [vmem:[%s1121_s1 + $0x28] sm:$0xff] }
   0x8   :  { %747 = vmatprep.subr.mxu0 %v29_v4  ;;  %63 = vperm.xlu1 %796, %v45_v9   ;;  %v38_v17 = vld [vmem:[%s1121_s1 + $0x30] sm:$0xff]  ;;  %v49_v18 = vld [vmem:[%s1122_s2 + $0x28] sm:$0xff] }
   0x9   :  { %748 = vmatpush3.msra.mxu0 %v29_v4 }
   0xa   :  { %750 = vmatmul.mubr.msk.f32.vlgmr.msra.gmra.mxu0 %vm116_vm1, %v33_v6 }
   0xb   :  { %752 = vmatprep.mubr.msk.f32.mxu0 %vm116_vm1, %v34_v8  ;;  %68 = vperm.xlu0 %795, %v46_v10  }
   0xc   :  { %58 = vperm.xlu1 %796, %v44_v11  }
   0xe   :  { %753 = vmatmul.mubr.msk.f32.gmra.mxu0 %vm116_vm1, %v35_v12 }
   0xf   :  { %755 = vmatprep.mubr.msk.f32.mxu0 %vm116_vm1, %v36_v13  ;;  %93 = vperm.xlu0 %795, %v51_v14  }
  0x10   :  { %88 = vperm.xlu1 %796, %v50_v15  }
  0x11   :  { %14 = vsyncpa [#allocation4], 0  ;;  %v48_v19 = vld [vmem:[%s1122_s2 + $0x20] sm:$0xff]  ;;  %v39_v20 = vld [vmem:[%s1121_s1 + $0x38] sm:$0xff]  ;;  %vm414_vm2 = vcmask 261120  }
  0x12   :  { %756 = vmatmul.mubr.msk.f32.gmra.mxu0 %vm116_vm1, %v37_v16  ;;  %v40_v21 = vld [vmem:[%s1121_s1 + $0x40] sm:$0xff]  ;;  %v55_v22 = vld [vmem:[%s1122_s2 + $0x58] sm:$0xff]  ;;  %v54_v23 = vld [vmem:[%s1122_s2 + $0x50] sm:$0xff] }
  0x13   :  { %758 = vmatprep.mubr.msk.f32.mxu0 %vm116_vm1, %v38_v17  ;;  %83 = vperm.xlu0 %795, %v49_v18   ;;  %v41_v24 = vld [vmem:[%s1121_s1 + $0x48] sm:$0xff]  ;;  %v42_v25 = vld [vmem:[%s1121_s1 + $0x50] sm:$0xff]  ;;  %v52_v27 = vld [vmem:[%s1122_s2 + $0x40] sm:$0xff] }
  0x14   :  { %78 = vperm.xlu1 %796, %v48_v19   ;;  %v53_v26 = vld [vmem:[%s1122_s2 + $0x48] sm:$0xff]  ;;  %v43_v28 = vld [vmem:[%s1121_s1 + $0x58] sm:$0xff]  ;;  %v342_v29 = vld [vmem:[%s1124_s4] sm:$0xff] }
  0x15   :  { %v343_v30 = vld [vmem:[%s1124_s4 + $0x8] sm:$0xff]  ;;  %v344_v31 = vld [vmem:[%s1124_s4 + $0x10] sm:$0xff]  ;;  %v345_v32 = vld [vmem:[%s1124_s4 + $0x18] sm:$0xff] }
  0x16   :  { %759 = vmatmul.mubr.msk.f32.gmra.mxu0 %vm116_vm1, %v39_v20  ;;  %v346_v33 = vld [vmem:[%s1124_s4 + $0x20] sm:$0xff]  ;;  %v347_v34 = vld [vmem:[%s1124_s4 + $0x28] sm:$0xff]  ;;  %v348_v35 = vld [vmem:[%s1124_s4 + $0x30] sm:$0xff] }
  0x17   :  { %761 = vmatprep.mubr.msk.f32.mxu0 %vm116_vm1, %v40_v21  ;;  %113 = vperm.xlu0 %795, %v55_v22   ;;  %v349_v36 = vld [vmem:[%s1124_s4 + $0x38] sm:$0xff]  ;;  %v350_v37 = vld [vmem:[%s1124_s4 + $0x40] sm:$0xff]  ;;  %v351_v38 = vld [vmem:[%s1124_s4 + $0x48] sm:$0xff] }
  0x18   :  { %108 = vperm.xlu1 %796, %v54_v23   ;;  %v352_v39 = vld [vmem:[%s1124_s4 + $0x50] sm:$0xff]  ;;  %v353_v40 = vld [vmem:[%s1124_s4 + $0x58] sm:$0xff]  ;;  %v624_v41 = vld [vmem:[%s1125_s5] sm:$0xff] }
  0x19   :  { %v625_v42 = vld [vmem:[%s1125_s5 + $0x8] sm:$0xff]  ;;  %v626_v43 = vld [vmem:[%s1125_s5 + $0x10] sm:$0xff]  ;;  %v627_v44 = vld [vmem:[%s1125_s5 + $0x18] sm:$0xff] }
  0x1a   :  { %762 = vmatmul.mubr.msk.f32.gmra.mxu0 %vm116_vm1, %v41_v24  ;;  %v661_v45 = vld [vmem:[#allocation2] sm:$0x1] }
  0x1b   :  { %764 = vmatprep.mubr.msk.f32.mxu0 %vm116_vm1, %v42_v25  ;;  %103 = vperm.xlu0 %795, %v53_v26   ;;  %v330_v46 = vld [vmem:[%s1123_s3] sm:$0xff] }
  0x1c   :  { %98 = vperm.xlu1 %796, %v52_v27   ;;  %775 = vmatprep.mubr.msk.f32.mxu1 %vm414_vm2, %v330_v46 }
  0x1e   :  { %765 = vmatmul.mubr.msk.f32.gmra.mxu0 %vm116_vm1, %v43_v28 }
  0x1f   :  { %356 = vperm.xlu0 %795, %v342_v29  }
  0x20   :  { %361 = vperm.xlu1 %796, %v343_v30  }
  0x23   :  { %366 = vperm.xlu0 %795, %v344_v31  }
  0x24   :  { %371 = vperm.xlu1 %796, %v345_v32  }
  0x27   :  { %376 = vperm.xlu0 %795, %v346_v33  }
  0x28   :  { %381 = vperm.xlu1 %796, %v347_v34  }
  0x2b   :  { %386 = vperm.xlu0 %795, %v348_v35  }
  0x2c   :  { %391 = vperm.xlu1 %796, %v349_v36  }
  0x2f   :  { %396 = vperm.xlu0 %795, %v350_v37  }
  0x30   :  { %401 = vperm.xlu1 %796, %v351_v38  }
  0x33   :  { %406 = vperm.xlu0 %795, %v352_v39  }
  0x34   :  { %411 = vperm.xlu1 %796, %v353_v40  }
  0x37   :  { %630 = vperm.xlu0 %795, %v624_v41  }
  0x38   :  { %635 = vperm.xlu1 %796, %v625_v42  }
  0x3b   :  { %640 = vperm.xlu0 %795, %v626_v43  }
  0x3c   :  { %645 = vperm.xlu1 %796, %v627_v44  }
  0x3f   :  { %664 = vperm.xlu0 %795, %v661_v45  }
  0x82   :  { %v74_v47 = vpop.permute.xlu0 %73 }
  0x83   :  { %v64_v48 = vpop.permute.xlu1 %63 }
  0x86   :  { %v69_v49 = vpop.permute.xlu0 %68 }
  0x87   :  { %v59_v50 = vpop.permute.xlu1 %58 }
  0x8a   :  { %v94_v51 = vpop.permute.xlu0 %93 }
  0x8b   :  { %v89_v54 = vpop.permute.xlu1 %88 }
  0x8e   :  { %v84_v58 = vpop.permute.xlu0 %83 }
  0x8f   :  { %v79_v1 = vpop.permute.xlu1 %78 }
  0x92   :  { %v114_v5 = vpop.permute.xlu0 %113 }
  0x93   :  { %v109_v10 = vpop.permute.xlu1 %108 }
  0x96   :  { %v104_v13 = vpop.permute.xlu0 %103 }
  0x97   :  { %v99_v18 = vpop.permute.xlu1 %98 }
  0xca   :  { %v751_v52 = vpop.f32.mrf.mxu0 }
  0xcb   :  { %v229_v53 = vadd.f32 %v751_v52, %v64_v48 }
  0xcc   :  { %v223_v55 = vpop.f32.mrf.mxu0 }
  0xcd   :  { %v283_v56 = vmul.f32 0.5, %v229_v53  ;;  %v224_v57 = vadd.f32 %v223_v55, %v59_v50 }
  0xce   :  { %v754_v59 = vpop.f32.mrf.mxu0 }
  0xcf   :  { %v282_v60 = vmul.f32 0.5, %v224_v57  ;;  %v239_v61 = vadd.f32 %v754_v59, %v74_v47  ;;  %797 = vtanh.f32 %v283_v56 }
  0xd0   :  { %v233_v62 = vpop.f32.mrf.mxu0 }
  0xd1   :  { %v285_v63 = vmul.f32 0.5, %v239_v61  ;;  %v234_v0 = vadd.f32 %v233_v62, %v69_v49  ;;  %799 = vtanh.f32 %v282_v60 }
  0xd2   :  { %v757_v2 = vpop.f32.mrf.mxu0 }
  0xd3   :  { %801 = vtanh.f32 %v285_v63  ;;  %v284_v3 = vmul.f32 0.5, %v234_v0  ;;  %v249_v4 = vadd.f32 %v757_v2, %v84_v58 }
  0xd4   :  { %v243_v6 = vpop.f32.mrf.mxu0 }
  0xd5   :  { %803 = vtanh.f32 %v284_v3  ;;  %v244_v7 = vadd.f32 %v243_v6, %v79_v1  ;;  %v331_v3 = vld [vmem:[%s1123_s3 + $0x8] sm:$0xff]  ;;  %v334_v6 = vld [vmem:[%s1123_s3 + $0x20] sm:$0xff] }
  0xd6   :  { %805 = vtanh.f32 %v249_v4  ;;  %v760_v8 = vpop.f32.mrf.mxu0  ;;  %v332_v4 = vld [vmem:[%s1123_s3 + $0x10] sm:$0xff] }
  0xd7   :  { %v259_v9 = vadd.f32 %v760_v8, %v94_v51  ;;  %807 = vtanh.f32 %v244_v7  ;;  %v335_v7 = vld [vmem:[%s1123_s3 + $0x28] sm:$0xff]  ;;  %v336_v8 = vld [vmem:[%s1123_s3 + $0x30] sm:$0xff] }
  0xd8   :  { %v253_v11 = vpop.f32.mrf.mxu0 }
  0xd9   :  { %809 = vtanh.f32 %v259_v9  ;;  %v254_v12 = vadd.f32 %v253_v11, %v89_v54  ;;  %v337_v9 = vld [vmem:[%s1123_s3 + $0x38] sm:$0xff]  ;;  %v339_v11 = vld [vmem:[%s1123_s3 + $0x48] sm:$0xff] }
  0xda   :  { %v763_v14 = vpop.f32.mrf.mxu0 }
  0xdb   :  { %811 = vtanh.f32 %v254_v12  ;;  %v269_v15 = vadd.f32 %v763_v14, %v104_v13  ;;  %v340_v12 = vld [vmem:[%s1123_s3 + $0x50] sm:$0xff]  ;;  %v341_v13 = vld [vmem:[%s1123_s3 + $0x58] sm:$0xff]  ;;  %v362_v14 = vpop.permute.xlu1 %361 }
  0xdc   :  { %v263_v16 = vpop.f32.mrf.mxu0  ;;  %v798_v17 = vpop.eup %797 }
  0xdd   :  { %v303_v21 = vmul.f32 0.5, %v269_v15  ;;  %v264_v22 = vadd.f32 %v263_v16, %v99_v18  ;;  %v291_v24 = vadd.f32 1.0, %v798_v17  ;;  %v357_v15 = vpop.permute.xlu0 %356 }
  0xde   :  { %v766_v19 = vpop.f32.mrf.mxu0  ;;  %v800_v20 = vpop.eup %799 }
  0xdf   :  { %v279_v25 = vadd.f32 %v766_v19, %v114_v5  ;;  %v290_v30 = vadd.f32 1.0, %v800_v20  ;;  %813 = vtanh.f32 %v303_v21  ;;  %v302_v34 = vmul.f32 0.5, %v264_v22  ;;  %v333_v5 = vld [vmem:[%s1123_s3 + $0x18] sm:$0xff]  ;;  %v372_v16 = vpop.permute.xlu1 %371 }
  0xe0   :  { %v802_v23 = vpop.eup %801  ;;  %v273_v26 = vpop.f32.mrf.mxu0  ;;  %v295_v36 = vmul.f32 0.5, %v291_v24 }
  0xe1   :  { %v293_v27 = vadd.f32 1.0, %v802_v23  ;;  %v274_v28 = vadd.f32 %v273_v26, %v109_v10  ;;  %v305_v31 = vmul.f32 0.5, %v279_v25  ;;  %v294_v41 = vmul.f32 0.5, %v290_v30  ;;  %v338_v10 = vld [vmem:[%s1123_s3 + $0x40] sm:$0xff]  ;;  %v367_v17 = vpop.permute.xlu0 %366  ;;  %s884_s3 = smov [#allocation3]  }
  0xe2   :  { %v804_v29 = vpop.eup %803  ;;  %s679_s30 = sshll.u32 %s884_s3, 4  ;;  %s680_s30 = int_to_ptr.vmem [resolvable:$true] %s679_s30 }
  0xe3   :  { %v806_v32 = vpop.eup %805  ;;  %v292_v33 = vadd.f32 1.0, %v804_v29  ;;  %v304_v35 = vmul.f32 0.5, %v274_v28  ;;  %815 = vtanh.f32 %v305_v31  ;;  %v297_v38 = vmul.f32 0.5, %v293_v27  ;;  %v382_v21 = vpop.permute.xlu1 %381  ;;  %s861_s8 = scalar_lea.vmem %s680_s30, 16  ;;  %s865_s9 = scalar_lea.vmem %s680_s30, 32 }
  0xe4   :  { %v808_v37 = vpop.eup %807  ;;  %v319_v40 = vmul.f32 %v806_v32, %v295_v36  ;;  %p862_p0 = scmp.ne.s32.totalorder %s680_s30, %s861_s8  ;;  %p866_p1 = scmp.lt.s32.totalorder %s680_s30, %s680_s30 }
  0xe5   :  { %817 = vtanh.f32 %v304_v35  ;;  %v296_v42 = vmul.f32 0.5, %v292_v33  ;;  %v318_v45 = vmul.f32 %v808_v37, %v294_v41  ;;  %v377_v24 = vpop.permute.xlu0 %376  ;;  %p867_p2 = scmp.lt.s32.totalorder %s865_s9, %s861_s8 }
  0xe6   :  { %v810_v39 = vpop.eup %809  ;;  %819 = vtanh.f32 %v302_v34 }
  0xe7   :  { %v321_v43 = vmul.f32 %v810_v39, %v297_v38  ;;  %v392_v32 = vpop.permute.xlu1 %391  ;;  %p868_p3 = por %p867_p2, %p866_p1 }
  0xe8   :  { %v812_v44 = vpop.eup %811 }
  0xe9   :  { %v320_v46 = vmul.f32 %v812_v44, %v296_v42  ;;  %821 = vtanh.f32 %v321_v43  ;;  %v387_v35 = vpop.permute.xlu0 %386  ;;  %p869_p4 = pnand %p868_p3, %p862_p0 }
  0xea   :  { %823 = vtanh.f32 %v319_v40 }
  0xeb   :  { %825 = vtanh.f32 %v320_v46  ;;  %v402_v41 = vpop.permute.xlu1 %401 }
  0xec   :  { %827 = vtanh.f32 %v318_v45  ;;  %v814_v47 = vpop.eup %813 }
  0xed   :  { %v311_v53 = vadd.f32 1.0, %v814_v47  ;;  %v397_v43 = vpop.permute.xlu0 %396 }
  0xef   :  { %v315_v61 = vmul.f32 0.5, %v311_v53  ;;  %v412_v53 = vpop.permute.xlu1 %411 }
  0xf0   :  { %v816_v48 = vpop.eup %815 }
  0xf1   :  { %v313_v50 = vadd.f32 1.0, %v816_v48 }
  0xf2   :  { %v818_v49 = vpop.eup %817 }
  0xf3   :  { %v312_v51 = vadd.f32 1.0, %v818_v49  ;;  %v820_v52 = vpop.eup %819  ;;  %v317_v54 = vmul.f32 0.5, %v313_v50 }
  0xf4   :  { %v310_v57 = vadd.f32 1.0, %v820_v52 }
  0xf5   :  { %v316_v58 = vmul.f32 0.5, %v312_v51 }
  0xf6   :  { %v822_v55 = vpop.eup %821  ;;  %v314_v0 = vmul.f32 0.5, %v310_v57  ;;  %v407_v57 = vpop.permute.xlu0 %406 }
  0xf7   :  { %v824_v56 = vpop.eup %823  ;;  %v329_v59 = vmul.f32 %v822_v55, %v317_v54 }
  0xf8   :  { %v826_v60 = vpop.eup %825  ;;  %v327_v1 = vmul.f32 %v824_v56, %v315_v61 }
  0xf9   :  { %767 = vmatprep.subr.mxu1 %v329_v59  ;;  %v328_v62 = vmul.f32 %v826_v60, %v316_v58  ;;  %v828_v63 = vpop.eup %827 }
  0xfa   :  { %768 = vmatpush3.msra.mxu1 %v329_v59  ;;  %v326_v2 = vmul.f32 %v828_v63, %v314_v0 }
  0xfb   :  { %769 = vmatprep.subr.mxu1 %v328_v62 }
  0xfc   :  { %770 = vmatpush3.msra.mxu1 %v328_v62 }
  0xfd   :  { %771 = vmatprep.subr.mxu1 %v327_v1 }
  0xfe   :  { %772 = vmatpush3.msra.mxu1 %v327_v1 }
  0xff   :  { %773 = vmatprep.subr.mxu1 %v326_v2 }
 0x100   :  { %774 = vmatpush3.msra.mxu1 %v326_v2 }
 0x101   :  { %776 = vmatmul.mubr.msk.f32.vlgmr.msra.gmra.mxu1 %vm414_vm2, %v331_v3 }
 0x102   :  { %778 = vmatprep.mubr.msk.f32.mxu1 %vm414_vm2, %v332_v4 }
 0x105   :  { %779 = vmatmul.mubr.msk.f32.gmra.mxu1 %vm414_vm2, %v333_v5 }
 0x106   :  { %781 = vmatprep.mubr.msk.f32.mxu1 %vm414_vm2, %v334_v6 }
 0x109   :  { %782 = vmatmul.mubr.msk.f32.gmra.mxu1 %vm414_vm2, %v335_v7 }
 0x10a   :  { %784 = vmatprep.mubr.msk.f32.mxu1 %vm414_vm2, %v336_v8 }
 0x10d   :  { %785 = vmatmul.mubr.msk.f32.gmra.mxu1 %vm414_vm2, %v337_v9 }
 0x10e   :  { %787 = vmatprep.mubr.msk.f32.mxu1 %vm414_vm2, %v338_v10 }
 0x111   :  { %788 = vmatmul.mubr.msk.f32.gmra.mxu1 %vm414_vm2, %v339_v11 }
 0x112   :  { %790 = vmatprep.mubr.msk.f32.mxu1 %vm414_vm2, %v340_v12 }
 0x115   :  { %791 = vmatmul.mubr.msk.f32.gmra.mxu1 %vm414_vm2, %v341_v13 }
 0x1c1   :  { %v777_v18 = vpop.f32.mrf.mxu1 }
 0x1c2   :  { %v523_v19 = vadd.f32 %v777_v18, %v362_v14 }
 0x1c3   :  { %v517_v20 = vpop.f32.mrf.mxu1 }
 0x1c4   :  { %v577_v22 = vmul.f32 0.5, %v523_v19  ;;  %v518_v23 = vadd.f32 %v517_v20, %v357_v15 }
 0x1c5   :  { %v780_v25 = vpop.f32.mrf.mxu1 }
 0x1c6   :  { %829 = vtanh.f32 %v577_v22  ;;  %v576_v26 = vmul.f32 0.5, %v518_v23  ;;  %v533_v27 = vadd.f32 %v780_v25, %v372_v16 }
 0x1c7   :  { %v527_v28 = vpop.f32.mrf.mxu1 }
 0x1c8   :  { %831 = vtanh.f32 %v576_v26  ;;  %v579_v29 = vmul.f32 0.5, %v533_v27  ;;  %v528_v30 = vadd.f32 %v527_v28, %v367_v17  ;;  %v631_v26 = vpop.permute.xlu0 %630 }
 0x1c9   :  { %v783_v31 = vpop.f32.mrf.mxu1 }
 0x1ca   :  { %833 = vtanh.f32 %v579_v29  ;;  %v578_v33 = vmul.f32 0.5, %v528_v30  ;;  %v543_v34 = vadd.f32 %v783_v31, %v382_v21  ;;  %v636_v30 = vpop.permute.xlu1 %635 }
 0x1cb   :  { %v537_v36 = vpop.f32.mrf.mxu1 }
 0x1cc   :  { %835 = vtanh.f32 %v578_v33  ;;  %v538_v37 = vadd.f32 %v537_v36, %v377_v24 }
 0x1cd   :  { %837 = vtanh.f32 %v543_v34  ;;  %v786_v38 = vpop.f32.mrf.mxu1 }
 0x1ce   :  { %839 = vtanh.f32 %v538_v37  ;;  %v553_v39 = vadd.f32 %v786_v38, %v392_v32  ;;  %v641_v38 = vpop.permute.xlu0 %640 }
 0x1cf   :  { %v547_v40 = vpop.f32.mrf.mxu1 }
 0x1d0   :  { %841 = vtanh.f32 %v553_v39  ;;  %v548_v42 = vadd.f32 %v547_v40, %v387_v35 }
 0x1d1   :  { %v789_v44 = vpop.f32.mrf.mxu1 }
 0x1d2   :  { %843 = vtanh.f32 %v548_v42  ;;  %v563_v45 = vadd.f32 %v789_v44, %v402_v41  ;;  %v646_v41 = vpop.permute.xlu1 %645  ;;  %v667_v44 = vlaneseq }
 0x1d3   :  { %v830_v46 = vpop.eup %829  ;;  %v557_v47 = vpop.f32.mrf.mxu1 }
 0x1d4   :  { %v597_v48 = vmul.f32 0.5, %v563_v45  ;;  %v558_v49 = vadd.f32 %v557_v47, %v397_v43  ;;  %v585_v51 = vadd.f32 1.0, %v830_v46  ;;  %v668_v47 = vshrl.u32 %v667_v44, 7 }
 0x1d5   :  { %v832_v50 = vpop.eup %831  ;;  %v792_v52 = vpop.f32.mrf.mxu1 }
 0x1d6   :  { %v584_v54 = vadd.f32 1.0, %v832_v50  ;;  %845 = vtanh.f32 %v597_v48  ;;  %v596_v55 = vmul.f32 0.5, %v558_v49  ;;  %v573_v58 = vadd.f32 %v792_v52, %v412_v53  ;;  %v665_v52 = vpop.permute.xlu0 %664 }
 0x1d7   :  { %v834_v56 = vpop.eup %833  ;;  %v567_v59 = vpop.f32.mrf.mxu1  ;;  %v589_v63 = vmul.f32 0.5, %v585_v51  ;;  %v669_v50 = vsub.s32 0, %v668_v47 }
 0x1d8   :  { %v587_v60 = vadd.f32 1.0, %v834_v56  ;;  %847 = vtanh.f32 %v596_v55  ;;  %v568_v61 = vadd.f32 %v567_v59, %v407_v57  ;;  %v599_v0 = vmul.f32 0.5, %v573_v58 }
 0x1d9   :  { %v836_v62 = vpop.eup %835  ;;  %v588_v2 = vmul.f32 0.5, %v584_v54  ;;  %v670_v54 = vrot.slane %v665_v52, %v669_v50 }
 0x1da   :  { %v838_v1 = vpop.eup %837  ;;  %v586_v3 = vadd.f32 1.0, %v836_v62  ;;  %v598_v4 = vmul.f32 0.5, %v568_v61  ;;  %849 = vtanh.f32 %v599_v0  ;;  %v591_v7 = vmul.f32 0.5, %v587_v60 }
 0x1db   :  { %v840_v5 = vpop.eup %839  ;;  %v613_v6 = vmul.f32 %v838_v1, %v589_v63 }
 0x1dc   :  { %v612_v8 = vmul.f32 %v840_v5, %v588_v2  ;;  %851 = vtanh.f32 %v598_v4  ;;  %v590_v10 = vmul.f32 0.5, %v586_v3 }
 0x1dd   :  { %v842_v9 = vpop.eup %841  ;;  %853 = vtanh.f32 %v613_v6 }
 0x1de   :  { %855 = vtanh.f32 %v612_v8  ;;  %v615_v11 = vmul.f32 %v842_v9, %v591_v7 }
 0x1df   :  { %v844_v12 = vpop.eup %843 }
 0x1e0   :  { %857 = vtanh.f32 %v615_v11  ;;  %v614_v13 = vmul.f32 %v844_v12, %v590_v10 }
 0x1e2   :  { %859 = vtanh.f32 %v614_v13 }
 0x1e3   :  { %v846_v14 = vpop.eup %845 }
 0x1e4   :  { %v605_v16 = vadd.f32 1.0, %v846_v14 }
 0x1e5   :  { %v848_v15 = vpop.eup %847 }
 0x1e6   :  { %v604_v17 = vadd.f32 1.0, %v848_v15  ;;  %v609_v21 = vmul.f32 0.5, %v605_v16 }
 0x1e7   :  { %v850_v18 = vpop.eup %849 }
 0x1e8   :  { %v608_v22 = vmul.f32 0.5, %v604_v17  ;;  %v607_v23 = vadd.f32 1.0, %v850_v18 }
 0x1e9   :  { %v852_v19 = vpop.eup %851 }
 0x1ea   :  { %v854_v20 = vpop.eup %853  ;;  %v606_v24 = vadd.f32 1.0, %v852_v19  ;;  %v611_v32 = vmul.f32 0.5, %v607_v23 }
 0x1eb   :  { %v856_v25 = vpop.eup %855  ;;  %v621_v27 = vmul.f32 %v854_v20, %v609_v21 }
 0x1ec   :  { %v620_v28 = vmul.f32 %v856_v25, %v608_v22  ;;  %v610_v33 = vmul.f32 0.5, %v606_v24 }
 0x1ed   :  { %v858_v29 = vpop.eup %857  ;;  %v649_v35 = vmul.f32 %v636_v30, %v621_v27 }
 0x1ee   :  { %v648_v31 = vmul.f32 %v631_v26, %v620_v28  ;;  %v623_v36 = vmul.f32 %v858_v29, %v611_v32 }
 0x1ef   :  { %v860_v34 = vpop.eup %859 }
 0x1f0   :  { %v622_v37 = vmul.f32 %v860_v34, %v610_v33  ;;  %v652_v39 = vadd.f32 %v649_v35, %v648_v31  ;;  %v651_v42 = vmul.f32 %v646_v41, %v623_v36 }
 0x1f2   :  { %v650_v40 = vmul.f32 %v641_v38, %v622_v37 }
 0x1f4   :  { %v653_v43 = vadd.f32 %v652_v39, %v650_v40 }
 0x1f6   :  { %v654_v45 = vadd.f32 %v653_v43, %v651_v42 }
 0x1f8   :  { %v655_v46 = vrot.slane %v654_v45, 4 }
 0x1fa   :  { %v656_v48 = vadd.f32 %v655_v46, %v654_v45 }
 0x1fc   :  { %v657_v49 = vrot.slane %v656_v48, 2 }
 0x1fe   :  { %v658_v51 = vadd.f32 %v657_v49, %v656_v48 }
 0x200   :  { %v659_v53 = vrot.slane %v658_v51, 1 }
 0x202   :  { %v660_v55 = vadd.f32 %v659_v53, %v658_v51 }
 0x204   :  { %v671_v56 = vadd.f32 %v670_v54, %v660_v55 }
 0x206   :  { %672 = vst [vmem:[#allocation3] sm:$0x1] %v671_v56 }
 0x207   :  { %872 = shalt.err (!%p869_p4)
}
 0x208   :  { %682 = dma.vmem_to_hbm [thread:$0]  %s680_s30, 16, %s1127_s7, [#allocation4]  }
 0x209   :  { %881 = dma.done.wait [#allocation4], 16  }
 0x20a   :  { %882 = vsyncadd [#allocation4], 4294967280 }
 0x20b   :  { %686 = vsyncpa [#allocation4], 1 }

</bundles_post_ra>
